<compile_context>
chip_gen: v5e
topology: v5e:2x2
jax: 0.10.0
libtpu: 0.0.40
codegen_flags: <defaults>
</compile_context>

<pallas_src>
import functools

import jax
import jax.numpy as jnp
from jax.experimental import pallas as pl
from jax.experimental.pallas import tpu as pltpu


def _make_rnn_kernel(seq_len, batch_p, pred_length, input_size, output_size,
                     compute_dtype):
    """Build the single-invocation RNN kernel (all shape params are static)."""
    tail_start = seq_len - pred_length

    def kernel(x_ref, h0_ref, wih_ref, whh_ref, b_ref, wl_ref, bl_ref, out_ref):
        # ---- 0) Hoist constant weights out of the recurrence -----------------
        # W_hh is loaded exactly once and stays in vregs for every step of the
        # serial chain (review item 1).
        whh = whh_ref[...]                     # (H, H), compute_dtype
        wl = wl_ref[...]                       # head weights (layout below)
        b = b_ref[...]                         # (1, H), f32 (b_ih + b_hh)

        # ---- 1) Hoisted input projection for the WHOLE sequence --------------
        if input_size == 1:
            # K=1 matmul degenerates on the MXU; use a VPU broadcast FMA:
            #   prex[t*B + i, :] = x[t, i, 0] * W_ih[0, :] + (b_ih + b_hh)
            prex = x_ref[...] * wih_ref[...] + b            # (S*B, H), f32
        else:
            prex = jnp.dot(x_ref[...].astype(compute_dtype), wih_ref[...],
                           preferred_element_type=jnp.float32) + b

        # ---- 2) Sequential recurrence (fully unrolled, carry lives in vregs) -
        h = h0_ref[...]                                     # (B, H), f32 carry
        tail = []
        for t in range(seq_len):
            pre = prex[t * batch_p:(t + 1) * batch_p, :] + jnp.dot(
                h.astype(compute_dtype), whh,
                preferred_element_type=jnp.float32)
            h = jnp.tanh(pre)                               # f32
            if t >= tail_start:                             # keep only the tail
                tail.append(h)

        tail_h = jnp.concatenate(tail, axis=0)              # (pred_len*B, H)

        # ---- 3) Linear + ReLU head over the last pred_length steps only ------
        if output_size == 1:
            # N=1 head: VPU multiply + lane reduction, wl is (1, H) f32.
            pred = jnp.sum(tail_h * wl, axis=-1, keepdims=True) + bl_ref[...]
        else:
            pred = jnp.dot(tail_h.astype(compute_dtype), wl,
                           preferred_element_type=jnp.float32) + bl_ref[...]
        out_ref[...] = jnp.maximum(pred, 0.0).astype(out_ref.dtype)

    return kernel


@functools.partial(jax.jit, static_argnames=("pred_length", "use_bf16"))
def rnn_forward(input_seq, h0, params, *, pred_length, use_bf16=True):
    """Mirrors RNN.forward(input_seq, batch_size, hidden_cell, pred_length)."""
    seq_len, batch, input_size = input_seq.shape
    hidden = h0.shape[-1]
    w_ih_t, w_hh_t, b_ih, b_hh, w_l_t, b_l = params
    output_size = w_l_t.shape[-1]
    assert 0 < pred_length <= seq_len

    compute_dtype = jnp.bfloat16 if use_bf16 else jnp.float32

    # Pad batch to the sublane packing of the recurrent-matmul LHS dtype:
    # 16 rows for bf16 (fully packed (16,128) tile), 8 rows for f32.
    sublane = 16 if use_bf16 else 8
    batch_p = max(sublane, pl.cdiv(batch, sublane) * sublane)
    pad_b = batch_p - batch
    x_p = jnp.pad(input_seq, ((0, 0), (0, pad_b), (0, 0)))
    h0_p = jnp.pad(h0, ((0, pad_b), (0, 0)))

    x2d = x_p.reshape(seq_len * batch_p, input_size)        # row = t*B + b
    b_comb = (b_ih + b_hh).reshape(1, hidden)                # pre-summed biases

    # Weight layouts / dtypes chosen per execution unit:
    #   input_size == 1  -> W_ih used on the VPU (keep f32, shape (1, H))
    #   output_size == 1 -> W_l used on the VPU as a (1, H) row (keep f32)
    wih = w_ih_t.astype(jnp.float32 if input_size == 1 else compute_dtype)
    whh = w_hh_t.astype(compute_dtype)
    if output_size == 1:
        wl = w_l_t.reshape(1, hidden).astype(jnp.float32)
    else:
        wl = w_l_t.astype(compute_dtype)

    kernel = _make_rnn_kernel(seq_len, batch_p, pred_length, input_size,
                              output_size, compute_dtype)
    vmem_spec = pl.BlockSpec(memory_space=pltpu.MemorySpace.VMEM)

    out2d = pl.pallas_call(
        kernel,
        out_shape=jax.ShapeDtypeStruct((pred_length * batch_p, output_size),
                                       jnp.float32),
        in_specs=[vmem_spec] * 7,
        out_specs=vmem_spec,
    )(x2d,
      h0_p.astype(jnp.float32),
      wih,
      whh,
      b_comb.astype(jnp.float32),
      wl,
      b_l.reshape(1, output_size).astype(jnp.float32))

    preds = out2d.reshape(pred_length, batch_p, output_size)
    return preds[:, :batch, :]


def init_params(key, input_size, hidden, output_size):
    """Deterministic PyTorch-style uniform(-1/sqrt(H), 1/sqrt(H)) init."""
    ks = jax.random.split(key, 6)
    bound = 1.0 / jnp.sqrt(hidden)
    u = lambda k, shape: jax.random.uniform(k, shape, jnp.float32, -bound, bound)
    w_ih = u(ks[0], (hidden, input_size))     # nn.RNN weight_ih_l0
    w_hh = u(ks[1], (hidden, hidden))         # nn.RNN weight_hh_l0
    b_ih = u(ks[2], (hidden,))
    b_hh = u(ks[3], (hidden,))
    w_l = u(ks[4], (output_size, hidden))     # nn.Linear weight
    b_l = u(ks[5], (output_size,))
    # Pre-transpose so the kernel performs plain row-major matmuls.
    return (w_ih.T, w_hh.T, b_ih, b_hh, w_l.T, b_l)


def reference_forward(input_seq, h0, params, pred_length):
    w_ih_t, w_hh_t, b_ih, b_hh, w_l_t, b_l = params

    def step(h, x_t):
        h_new = jnp.tanh(x_t @ w_ih_t + b_ih + h @ w_hh_t + b_hh)
        pred = jnp.maximum(h_new @ w_l_t + b_l, 0.0)
        return h_new, pred

    _, preds = jax.lax.scan(step, h0, input_seq)
    return preds[-pred_length:]


if __name__ == "__main__":
    # Small shapes consistent with the module's forward (time-major nn.RNN).
    seq_len, batch, input_size = 8, 2, 1
    hidden, output_size = 128, 1
    pred_length = 4

    key = jax.random.PRNGKey(0)
    k_x, k_h, k_p = jax.random.split(key, 3)

    input_seq = jax.random.normal(k_x, (seq_len, batch, input_size), jnp.float32)
    # PyTorch forward does hidden_cell = hidden_cell[0]; mimic an (h, c) tuple.
    h0_full = jax.random.normal(k_h, (1, batch, hidden), jnp.float32)
    hidden_cell = (h0_full, jnp.zeros_like(h0_full))
    h0 = hidden_cell[0][0]                     # (batch, hidden)

    params = init_params(k_p, input_size, hidden, output_size)

    ref = reference_forward(input_seq, h0, params, pred_length)

    # Default path: bf16 operands for the recurrent matmul, f32 carry/accum.
    out_bf16 = jax.block_until_ready(
        rnn_forward(input_seq, h0, params, pred_length=pred_length))
    assert out_bf16.shape == (pred_length, batch, output_size)
    assert jnp.max(jnp.abs(out_bf16 - ref)) < 1e-1, "bf16 Pallas output mismatch"

    # f32 path: exact module semantics.
    out_f32 = jax.block_until_ready(
        rnn_forward(input_seq, h0, params, pred_length=pred_length,
                    use_bf16=False))
    assert out_f32.shape == (pred_length, batch, output_size)
    assert jnp.max(jnp.abs(out_f32 - ref)) < 1e-2, "f32 Pallas output mismatch"

    print("KERNEL_OK")
</pallas_src>

<mosaic_0001>
module attributes {stable_mosaic.version = 11 : i64} {
  func.func @kernel(%arg0: memref<128x1xf32, #tpu.memory_space<vmem>>, %arg1: memref<16x128xf32, #tpu.memory_space<vmem>>, %arg2: memref<1x128xf32, #tpu.memory_space<vmem>>, %arg3: memref<128x128xbf16, #tpu.memory_space<vmem>>, %arg4: memref<1x128xf32, #tpu.memory_space<vmem>>, %arg5: memref<1x128xf32, #tpu.memory_space<vmem>>, %arg6: memref<1x1xf32, #tpu.memory_space<vmem>>, %arg7: memref<64x1xf32, #tpu.memory_space<vmem>>) attributes {dimension_semantics = [], scalar_prefetch = 0 : i64, scratch_operands = 0 : i64, tpu.core_type = #tpu.core_type<tc>} {
    %c0 = arith.constant 0 : index
    %c0_0 = arith.constant 0 : index
    %0 = vector.load %arg3[%c0, %c0_0] : memref<128x128xbf16, #tpu.memory_space<vmem>>, vector<128x128xbf16>
    %c0_1 = arith.constant 0 : index
    %c0_2 = arith.constant 0 : index
    %1 = vector.load %arg5[%c0_1, %c0_2] : memref<1x128xf32, #tpu.memory_space<vmem>>, vector<1x128xf32>
    %c0_3 = arith.constant 0 : index
    %c0_4 = arith.constant 0 : index
    %2 = vector.load %arg4[%c0_3, %c0_4] : memref<1x128xf32, #tpu.memory_space<vmem>>, vector<1x128xf32>
    %c0_5 = arith.constant 0 : index
    %c0_6 = arith.constant 0 : index
    %3 = vector.load %arg0[%c0_5, %c0_6] : memref<128x1xf32, #tpu.memory_space<vmem>>, vector<128x1xf32>
    %c0_7 = arith.constant 0 : index
    %c0_8 = arith.constant 0 : index
    %4 = vector.load %arg2[%c0_7, %c0_8] : memref<1x128xf32, #tpu.memory_space<vmem>>, vector<1x128xf32>
    %5 = vector.broadcast %3 : vector<128x1xf32> to vector<128x128xf32>
    %6 = vector.broadcast %4 : vector<1x128xf32> to vector<128x128xf32>
    %7 = arith.mulf %5, %6 : vector<128x128xf32>
    %8 = vector.broadcast %2 : vector<1x128xf32> to vector<128x128xf32>
    %9 = arith.addf %7, %8 : vector<128x128xf32>
    %c0_9 = arith.constant 0 : index
    %c0_10 = arith.constant 0 : index
    %10 = vector.load %arg1[%c0_9, %c0_10] : memref<16x128xf32, #tpu.memory_space<vmem>>, vector<16x128xf32>
    %11 = vector.extract_strided_slice %9 {offsets = [0, 0], sizes = [16, 128], strides = [1, 1]} : vector<128x128xf32> to vector<16x128xf32>
    %12 = arith.truncf %10 : vector<16x128xf32> to vector<16x128xbf16>
    %cst = arith.constant dense<0.000000e+00> : vector<16x128xf32>
    %13 = tpu.matmul %12, %0, %cst {dimension_numbers = #tpu.dot_dimension_numbers<[1], [0], [0], [1], [0, 0, 1, 1], [], []>} : vector<16x128xbf16>, vector<128x128xbf16>, vector<16x128xf32> -> vector<16x128xf32>
    %14 = arith.addf %11, %13 : vector<16x128xf32>
    %15 = math.tanh %14 : vector<16x128xf32>
    %16 = vector.extract_strided_slice %9 {offsets = [16, 0], sizes = [16, 128], strides = [1, 1]} : vector<128x128xf32> to vector<16x128xf32>
    %17 = arith.truncf %15 : vector<16x128xf32> to vector<16x128xbf16>
    %cst_11 = arith.constant dense<0.000000e+00> : vector<16x128xf32>
    %18 = tpu.matmul %17, %0, %cst_11 {dimension_numbers = #tpu.dot_dimension_numbers<[1], [0], [0], [1], [0, 0, 1, 1], [], []>} : vector<16x128xbf16>, vector<128x128xbf16>, vector<16x128xf32> -> vector<16x128xf32>
    %19 = arith.addf %16, %18 : vector<16x128xf32>
    %20 = math.tanh %19 : vector<16x128xf32>
    %21 = vector.extract_strided_slice %9 {offsets = [32, 0], sizes = [16, 128], strides = [1, 1]} : vector<128x128xf32> to vector<16x128xf32>
    %22 = arith.truncf %20 : vector<16x128xf32> to vector<16x128xbf16>
    %cst_12 = arith.constant dense<0.000000e+00> : vector<16x128xf32>
    %23 = tpu.matmul %22, %0, %cst_12 {dimension_numbers = #tpu.dot_dimension_numbers<[1], [0], [0], [1], [0, 0, 1, 1], [], []>} : vector<16x128xbf16>, vector<128x128xbf16>, vector<16x128xf32> -> vector<16x128xf32>
    %24 = arith.addf %21, %23 : vector<16x128xf32>
    %25 = math.tanh %24 : vector<16x128xf32>
    %26 = vector.extract_strided_slice %9 {offsets = [48, 0], sizes = [16, 128], strides = [1, 1]} : vector<128x128xf32> to vector<16x128xf32>
    %27 = arith.truncf %25 : vector<16x128xf32> to vector<16x128xbf16>
    %cst_13 = arith.constant dense<0.000000e+00> : vector<16x128xf32>
    %28 = tpu.matmul %27, %0, %cst_13 {dimension_numbers = #tpu.dot_dimension_numbers<[1], [0], [0], [1], [0, 0, 1, 1], [], []>} : vector<16x128xbf16>, vector<128x128xbf16>, vector<16x128xf32> -> vector<16x128xf32>
    %29 = arith.addf %26, %28 : vector<16x128xf32>
    %30 = math.tanh %29 : vector<16x128xf32>
    %31 = vector.extract_strided_slice %9 {offsets = [64, 0], sizes = [16, 128], strides = [1, 1]} : vector<128x128xf32> to vector<16x128xf32>
    %32 = arith.truncf %30 : vector<16x128xf32> to vector<16x128xbf16>
    %cst_14 = arith.constant dense<0.000000e+00> : vector<16x128xf32>
    %33 = tpu.matmul %32, %0, %cst_14 {dimension_numbers = #tpu.dot_dimension_numbers<[1], [0], [0], [1], [0, 0, 1, 1], [], []>} : vector<16x128xbf16>, vector<128x128xbf16>, vector<16x128xf32> -> vector<16x128xf32>
    %34 = arith.addf %31, %33 : vector<16x128xf32>
    %35 = math.tanh %34 : vector<16x128xf32>
    %36 = vector.extract_strided_slice %9 {offsets = [80, 0], sizes = [16, 128], strides = [1, 1]} : vector<128x128xf32> to vector<16x128xf32>
    %37 = arith.truncf %35 : vector<16x128xf32> to vector<16x128xbf16>
    %cst_15 = arith.constant dense<0.000000e+00> : vector<16x128xf32>
    %38 = tpu.matmul %37, %0, %cst_15 {dimension_numbers = #tpu.dot_dimension_numbers<[1], [0], [0], [1], [0, 0, 1, 1], [], []>} : vector<16x128xbf16>, vector<128x128xbf16>, vector<16x128xf32> -> vector<16x128xf32>
    %39 = arith.addf %36, %38 : vector<16x128xf32>
    %40 = math.tanh %39 : vector<16x128xf32>
    %41 = vector.extract_strided_slice %9 {offsets = [96, 0], sizes = [16, 128], strides = [1, 1]} : vector<128x128xf32> to vector<16x128xf32>
    %42 = arith.truncf %40 : vector<16x128xf32> to vector<16x128xbf16>
    %cst_16 = arith.constant dense<0.000000e+00> : vector<16x128xf32>
    %43 = tpu.matmul %42, %0, %cst_16 {dimension_numbers = #tpu.dot_dimension_numbers<[1], [0], [0], [1], [0, 0, 1, 1], [], []>} : vector<16x128xbf16>, vector<128x128xbf16>, vector<16x128xf32> -> vector<16x128xf32>
    %44 = arith.addf %41, %43 : vector<16x128xf32>
    %45 = math.tanh %44 : vector<16x128xf32>
    %46 = vector.extract_strided_slice %9 {offsets = [112, 0], sizes = [16, 128], strides = [1, 1]} : vector<128x128xf32> to vector<16x128xf32>
    %47 = arith.truncf %45 : vector<16x128xf32> to vector<16x128xbf16>
    %cst_17 = arith.constant dense<0.000000e+00> : vector<16x128xf32>
    %48 = tpu.matmul %47, %0, %cst_17 {dimension_numbers = #tpu.dot_dimension_numbers<[1], [0], [0], [1], [0, 0, 1, 1], [], []>} : vector<16x128xbf16>, vector<128x128xbf16>, vector<16x128xf32> -> vector<16x128xf32>
    %49 = arith.addf %46, %48 : vector<16x128xf32>
    %50 = math.tanh %49 : vector<16x128xf32>
    %51 = tpu.concatenate %35, %40, %45, %50 in 0 : vector<16x128xf32>, vector<16x128xf32>, vector<16x128xf32>, vector<16x128xf32> -> vector<64x128xf32>
    %52 = vector.broadcast %1 : vector<1x128xf32> to vector<64x128xf32>
    %53 = arith.mulf %51, %52 : vector<64x128xf32>
    %cst_18 = arith.constant dense<0.000000e+00> : vector<64xf32>
    %54 = vector.multi_reduction <add>, %53, %cst_18 [1] : vector<64x128xf32> to vector<64xf32>
    %55 = vector.shape_cast %54 : vector<64xf32> to vector<64x1xf32>
    %c0_19 = arith.constant 0 : index
    %c0_20 = arith.constant 0 : index
    %56 = vector.load %arg6[%c0_19, %c0_20] : memref<1x1xf32, #tpu.memory_space<vmem>>, vector<1x1xf32>
    %57 = vector.broadcast %56 : vector<1x1xf32> to vector<64x1xf32>
    %58 = arith.addf %55, %57 : vector<64x1xf32>
    %cst_21 = arith.constant 0.000000e+00 : f32
    %59 = vector.broadcast %cst_21 : f32 to vector<64x1xf32>
    %60 = arith.maximumf %58, %59 : vector<64x1xf32>
    %c0_22 = arith.constant 0 : index
    %c0_23 = arith.constant 0 : index
    %61 = vector.load %arg7[%c0_22, %c0_23] : memref<64x1xf32, #tpu.memory_space<vmem>>, vector<64x1xf32>
    tpu.vector_store %arg7[%c0_22, %c0_23], %60 {strides = array<i32>} : memref<64x1xf32, #tpu.memory_space<vmem>>, vector<64x1xf32>,
    return
  }
}

</mosaic_0001>

<bundles_post_ra>
// kernel: rnn_forward.1
= control target key start
LH: loop header
LB: loop body
LE: loop exit
PB: predicated region body
PF: predicated region fallthrough
CT: control target
= control target key end

     0   :  { %v523_v0 = vmov 0   ;;  %vm430_vm0 = vcmask 7168   ;;  %s745_s0 = inlined_call_operand.vmem [shape: f32[128,1], index: 0, kind: input, shape index: {}]   ;;  %s746_s3 = inlined_call_operand.vmem [shape: bf16[128,128], index: 3, kind: input, shape index: {}]   ;;  %s747_s2 = inlined_call_operand.vmem [shape: f32[1,128], index: 2, kind: input, shape index: {}]   ;;  %s748_s1 = inlined_call_operand.vmem [shape: f32[16,128], index: 1, kind: input, shape index: {}]   ;;  %s749_s4 = inlined_call_operand.vmem [shape: f32[1,128], index: 4, kind: input, shape index: {}]   ;;  %s750_s5 = inlined_call_operand.vmem [shape: f32[1,128], index: 5, kind: input, shape index: {}]   ;;  %s751_s6 = inlined_call_operand.<no memory space> [shape: f32[1,1], index: 6, kind: input, shape index: {}]   ;;  %s752_s7 = inlined_call_operand.vmem [shape: f32[64,1], index: 7, kind: output, shape index: {}]  }
   0x1   :  { %484 = vset.pattern.permute.xlu0 %v523_v0  ;;  %v46_v1 = vld [vmem:[%s745_s0] sm:$0xff]  ;;  %v482_v2 = vld [vmem:[%s746_s3 + $0x38] sm:$0xff]  ;;  %485 = vset.pattern.permute.xlu1 %v523_v0  ;;  %v481_v3 = vld [vmem:[%s746_s3 + $0x30] sm:$0xff] }
   0x2   :  { %65 = vperm.xlu0 %484, %v46_v1   ;;  %486 = vset.pattern.permute.xlu2 %v523_v0  ;;  %v47_v4 = vld [vmem:[%s745_s0 + $0x8] sm:$0xff]  ;;  %v479_v6 = vld [vmem:[%s746_s3 + $0x20] sm:$0xff]  ;;  %v52_v7 = vld [vmem:[%s745_s0 + $0x30] sm:$0xff] }
   0x3   :  { %232 = vmatpush.bf16.msra.mxu0 %v482_v2  ;;  %251 = vmatpush.bf16.msra.mxu1 %v482_v2  ;;  %v480_v5 = vld [vmem:[%s746_s3 + $0x28] sm:$0xff]  ;;  %v478_v8 = vld [vmem:[%s746_s3 + $0x18] sm:$0xff]  ;;  %v477_v9 = vld [vmem:[%s746_s3 + $0x10] sm:$0xff] }
   0x4   :  { %270 = vmatpush.bf16.msra.mxu2 %v482_v2  ;;  %289 = vmatpush.bf16.msra.mxu3 %v482_v2  ;;  %v55_v10 = vld [vmem:[%s745_s0 + $0x48] sm:$0xff]  ;;  %v475_v12 = vld [vmem:[%s746_s3] sm:$0xff]  ;;  %v61_v17 = vld [vmem:[%s745_s0 + $0x78] sm:$0xff] }
   0x5   :  { %v476_v11 = vld [vmem:[%s746_s3 + $0x8] sm:$0xff]  ;;  %v181_v13 = vld [vmem:[%s748_s1] sm:$0xff]  ;;  %v48_v18 = vld [vmem:[%s745_s0 + $0x10] sm:$0xff] }
   0x6   :  { %v182_v14 = vld [vmem:[%s748_s1 + $0x8] sm:$0xff]  ;;  %v58_v16 = vld [vmem:[%s745_s0 + $0x60] sm:$0xff]  ;;  %75 = vperm.xlu1 %485, %v48_v18   ;;  %v49_v19 = vld [vmem:[%s745_s0 + $0x18] sm:$0xff]  ;;  %v12_v18 = vstv %s751_s6 }
   0x7   :  { %233 = vmatpush.bf16.msra.mxu0 %v481_v3  ;;  %252 = vmatpush.bf16.msra.mxu1 %v481_v3  ;;  %v183_v15 = vpack.c.bf16 %v182_v14, %v181_v13  ;;  %v53_v20 = vld [vmem:[%s745_s0 + $0x38] sm:$0xff]  ;;  %v56_v21 = vld [vmem:[%s745_s0 + $0x50] sm:$0xff]  ;;  %v59_v23 = vld [vmem:[%s745_s0 + $0x68] sm:$0xff]  ;;  %13 = vst [vmem:[#allocation2] sm:$0x1] %v12_v18 }
   0x8   :  { %271 = vmatpush.bf16.msra.mxu2 %v481_v3  ;;  %290 = vmatpush.bf16.msra.mxu3 %v481_v3  ;;  %v630_v24 = vld [vmem:[%s747_s2] ss:$0 sm:$0xff]  ;;  %v51_v40 = vld [vmem:[%s745_s0 + $0x28] sm:$0xff]  ;;  %v57_v51 = vld [vmem:[%s745_s0 + $0x58] sm:$0xff] }
   0x9   :  { %v636_v26 = vld [vmem:[%s749_s4] ss:$0 sm:$0xff]  ;;  %v60_v55 = vld [vmem:[%s745_s0 + $0x70] sm:$0xff] }
   0xa   :  { %70 = vperm.xlu0 %484, %v47_v4   ;;  %v50_v38 = vld [vmem:[%s745_s0 + $0x20] sm:$0xff] }
   0xb   :  { %234 = vmatpush.bf16.msra.mxu0 %v480_v5  ;;  %253 = vmatpush.bf16.msra.mxu1 %v480_v5  ;;  %v54_v45 = vld [vmem:[%s745_s0 + $0x40] sm:$0xff] }
   0xc   :  { %272 = vmatpush.bf16.msra.mxu2 %v480_v5  ;;  %291 = vmatpush.bf16.msra.mxu3 %v480_v5 }
   0xd   :  { %85 = vperm.xlu2 %486, %v50_v38  }
   0xe   :  { %80 = vperm.xlu1 %485, %v49_v19  }
   0xf   :  { %235 = vmatpush.bf16.msra.mxu0 %v479_v6  ;;  %254 = vmatpush.bf16.msra.mxu1 %v479_v6 }
  0x10   :  { %273 = vmatpush.bf16.msra.mxu2 %v479_v6  ;;  %292 = vmatpush.bf16.msra.mxu3 %v479_v6 }
  0x12   :  { %95 = vperm.xlu0 %484, %v52_v7  }
  0x13   :  { %236 = vmatpush.bf16.msra.mxu0 %v478_v8  ;;  %255 = vmatpush.bf16.msra.mxu1 %v478_v8 }
  0x14   :  { %274 = vmatpush.bf16.msra.mxu2 %v478_v8  ;;  %293 = vmatpush.bf16.msra.mxu3 %v478_v8 }
  0x15   :  { %90 = vperm.xlu2 %486, %v51_v40   ;;  %v682_v40 = vld [vmem:[#allocation2] ss:$0 sm:$0xff] }
  0x16   :  { %100 = vperm.xlu1 %485, %v53_v20  }
  0x17   :  { %237 = vmatpush.bf16.msra.mxu0 %v477_v9  ;;  %256 = vmatpush.bf16.msra.mxu1 %v477_v9 }
  0x18   :  { %275 = vmatpush.bf16.msra.mxu2 %v477_v9  ;;  %294 = vmatpush.bf16.msra.mxu3 %v477_v9 }
  0x1a   :  { %110 = vperm.xlu0 %484, %v55_v10  }
  0x1b   :  { %238 = vmatpush.bf16.msra.mxu0 %v476_v11  ;;  %257 = vmatpush.bf16.msra.mxu1 %v476_v11 }
  0x1c   :  { %276 = vmatpush.bf16.msra.mxu2 %v476_v11  ;;  %295 = vmatpush.bf16.msra.mxu3 %v476_v11 }
  0x1d   :  { %105 = vperm.xlu2 %486, %v54_v45  }
  0x1e   :  { %115 = vperm.xlu1 %485, %v56_v21  }
  0x1f   :  { %239 = vmatpush.bf16.msra.mxu0 %v475_v12  ;;  %258 = vmatpush.bf16.msra.mxu1 %v475_v12 }
  0x20   :  { %277 = vmatpush.bf16.msra.mxu2 %v475_v12  ;;  %296 = vmatpush.bf16.msra.mxu3 %v475_v12 }
  0x22   :  { %125 = vperm.xlu0 %484, %v58_v16   ;;  %240 = vmatmul.bf16.vlgmr.msra.gmra.mxu0 %v183_v15 }
  0x23   :  { %308 = vmatpush.bf16.msrb.mxu0 %v482_v2  ;;  %327 = vmatpush.bf16.msrb.mxu1 %v482_v2 }
  0x24   :  { %346 = vmatpush.bf16.msrb.mxu2 %v482_v2  ;;  %365 = vmatpush.bf16.msrb.mxu3 %v482_v2 }
  0x25   :  { %120 = vperm.xlu2 %486, %v57_v51  }
  0x26   :  { %130 = vperm.xlu1 %485, %v59_v23  }
  0x27   :  { %309 = vmatpush.bf16.msrb.mxu0 %v481_v3  ;;  %328 = vmatpush.bf16.msrb.mxu1 %v481_v3 }
  0x28   :  { %347 = vmatpush.bf16.msrb.mxu2 %v481_v3  ;;  %366 = vmatpush.bf16.msrb.mxu3 %v481_v3 }
  0x2a   :  { %140 = vperm.xlu0 %484, %v61_v17  }
  0x2b   :  { %310 = vmatpush.bf16.msrb.mxu0 %v480_v5  ;;  %329 = vmatpush.bf16.msrb.mxu1 %v480_v5 }
  0x2c   :  { %348 = vmatpush.bf16.msrb.mxu2 %v480_v5  ;;  %367 = vmatpush.bf16.msrb.mxu3 %v480_v5 }
  0x2d   :  { %135 = vperm.xlu2 %486, %v60_v55  }
  0x2f   :  { %311 = vmatpush.bf16.msrb.mxu0 %v479_v6  ;;  %330 = vmatpush.bf16.msrb.mxu1 %v479_v6 }
  0x30   :  { %349 = vmatpush.bf16.msrb.mxu2 %v479_v6  ;;  %368 = vmatpush.bf16.msrb.mxu3 %v479_v6 }
  0x33   :  { %312 = vmatpush.bf16.msrb.mxu0 %v478_v8  ;;  %331 = vmatpush.bf16.msrb.mxu1 %v478_v8 }
  0x34   :  { %350 = vmatpush.bf16.msrb.mxu2 %v478_v8  ;;  %369 = vmatpush.bf16.msrb.mxu3 %v478_v8 }
  0x37   :  { %313 = vmatpush.bf16.msrb.mxu0 %v477_v9  ;;  %332 = vmatpush.bf16.msrb.mxu1 %v477_v9 }
  0x38   :  { %351 = vmatpush.bf16.msrb.mxu2 %v477_v9  ;;  %370 = vmatpush.bf16.msrb.mxu3 %v477_v9 }
  0x3b   :  { %314 = vmatpush.bf16.msrb.mxu0 %v476_v11  ;;  %333 = vmatpush.bf16.msrb.mxu1 %v476_v11 }
  0x3c   :  { %352 = vmatpush.bf16.msrb.mxu2 %v476_v11  ;;  %371 = vmatpush.bf16.msrb.mxu3 %v476_v11 }
  0x3f   :  { %315 = vmatpush.bf16.msrb.mxu0 %v475_v12  ;;  %334 = vmatpush.bf16.msrb.mxu1 %v475_v12 }
  0x40   :  { %353 = vmatpush.bf16.msrb.mxu2 %v475_v12  ;;  %372 = vmatpush.bf16.msrb.mxu3 %v475_v12 }
  0x67   :  { %v86_v56 = vpop.permute.xlu2 %85 }
  0x68   :  { %v150_v57 = vmul.f32 %v630_v24, %v86_v56 }
  0x6a   :  { %v169_v60 = vadd.f32 %v636_v26, %v150_v57 }
  0x6f   :  { %v91_v59 = vpop.permute.xlu2 %90 }
  0x70   :  { %v151_v61 = vmul.f32 %v630_v24, %v91_v59 }
  0x72   :  { %v170_v63 = vadd.f32 %v636_v26, %v151_v61 }
  0x74   :  { %v66_v22 = vpop.permute.xlu0 %65 }
  0x75   :  { %v146_v25 = vmul.f32 %v630_v24, %v66_v22 }
  0x77   :  { %v165_v29 = vadd.f32 %v636_v26, %v146_v25  ;;  %v106_v19 = vpop.permute.xlu2 %105 }
  0x78   :  { %v76_v39 = vpop.permute.xlu1 %75  ;;  %v154_v20 = vmul.f32 %v630_v24, %v106_v19 }
  0x79   :  { %v148_v41 = vmul.f32 %v630_v24, %v76_v39 }
  0x7a   :  { %v173_v21 = vadd.f32 %v636_v26, %v154_v20 }
  0x7b   :  { %v167_v44 = vadd.f32 %v636_v26, %v148_v41 }
  0x7c   :  { %v71_v28 = vpop.permute.xlu0 %70 }
  0x7d   :  { %v147_v30 = vmul.f32 %v630_v24, %v71_v28  ;;  %v677_v28 = vld [vmem:[%s750_s5] ss:$0 sm:$0xff] }
  0x7f   :  { %v166_v32 = vadd.f32 %v636_v26, %v147_v30  ;;  %v121_v38 = vpop.permute.xlu2 %120 }
  0x80   :  { %v81_v43 = vpop.permute.xlu1 %80 }
  0x81   :  { %v149_v46 = vmul.f32 %v630_v24, %v81_v43 }
  0x83   :  { %v168_v48 = vadd.f32 %v636_v26, %v149_v46 }
  0x84   :  { %v96_v5 = vpop.permute.xlu0 %95 }
  0x85   :  { %v152_v6 = vmul.f32 %v630_v24, %v96_v5 }
  0x87   :  { %v171_v10 = vadd.f32 %v636_v26, %v152_v6  ;;  %v684_v41 = vpop.permute.xlu2 %135 }
  0x88   :  { %v101_v8 = vpop.permute.xlu1 %100 }
  0x89   :  { %v153_v9 = vmul.f32 %v630_v24, %v101_v8 }
  0x8b   :  { %v172_v12 = vadd.f32 %v636_v26, %v153_v9 }
  0x8c   :  { %v111_v25 = vpop.permute.xlu0 %110 }
  0x94   :  { %v126_v61 = vpop.permute.xlu0 %125 }
  0x95   :  { %v158_v5 = vmul.f32 %v630_v24, %v126_v61 }
  0x97   :  { %v177_v6 = vadd.f32 %v636_v26, %v158_v5 }
  0x9f   :  { %v241_v27 = vpop.f32.mrf.mxu0 }
  0xa0   :  { %v246_v31 = vadd.f32 %v241_v27, %v165_v29  ;;  %v155_v27 = vmul.f32 %v630_v24, %v111_v25  ;;  %v160_v25 = vmul.f32 %v630_v24, %v684_v41 }
  0xa2   :  { %491 = vtanh.f32 %v246_v31  ;;  %v174_v29 = vadd.f32 %v636_v26, %v155_v27  ;;  %v179_v27 = vadd.f32 %v636_v26, %v160_v25 }
  0xa7   :  { %v243_v33 = vpop.f32.mrf.mxu0 }
  0xa8   :  { %v247_v34 = vadd.f32 %v243_v33, %v166_v32  ;;  %v492_v35 = vpop.eup %491 }
  0xaa   :  { %493 = vtanh.f32 %v247_v34 }
  0xb0   :  { %v494_v36 = vpop.eup %493 }
  0xb1   :  { %v250_v37 = vpack.c.bf16 %v494_v36, %v492_v35 }
  0xb3   :  { %259 = vmatmul.bf16.vlgmr.msra.gmra.mxu1 %v250_v37  ;;  %v116_v37 = vpop.permute.xlu1 %115 }
  0xbb   :  { %v131_v39 = vpop.permute.xlu1 %130 }
  0xbc   :  { %v159_v9 = vmul.f32 %v630_v24, %v131_v39 }
 0x130   :  { %v260_v42 = vpop.f32.mrf.mxu1 }
 0x131   :  { %v265_v47 = vadd.f32 %v260_v42, %v167_v44 }
 0x133   :  { %495 = vtanh.f32 %v265_v47 }
 0x138   :  { %v262_v49 = vpop.f32.mrf.mxu1 }
 0x139   :  { %v266_v50 = vadd.f32 %v262_v49, %v168_v48  ;;  %v496_v52 = vpop.eup %495  ;;  %v156_v48 = vmul.f32 %v630_v24, %v116_v37 }
 0x13b   :  { %497 = vtanh.f32 %v266_v50  ;;  %v175_v49 = vadd.f32 %v636_v26, %v156_v48 }
 0x141   :  { %v498_v53 = vpop.eup %497 }
 0x142   :  { %v269_v54 = vpack.c.bf16 %v498_v53, %v496_v52  ;;  %v157_v52 = vmul.f32 %v630_v24, %v121_v38 }
 0x144   :  { %278 = vmatmul.bf16.vlgmr.msra.gmra.mxu2 %v269_v54  ;;  %v176_v53 = vadd.f32 %v636_v26, %v157_v52 }
 0x1c7   :  { %v279_v58 = vpop.f32.mrf.mxu2 }
 0x1c8   :  { %v284_v62 = vadd.f32 %v279_v58, %v169_v60 }
 0x1ca   :  { %499 = vtanh.f32 %v284_v62  ;;  %v141_v62 = vpop.permute.xlu0 %140 }
 0x1cf   :  { %v281_v0 = vpop.f32.mrf.mxu2 }
 0x1d0   :  { %v285_v1 = vadd.f32 %v281_v0, %v170_v63  ;;  %v500_v2 = vpop.eup %499 }
 0x1d2   :  { %501 = vtanh.f32 %v285_v1 }
 0x1d8   :  { %v502_v3 = vpop.eup %501 }
 0x1d9   :  { %v288_v4 = vpack.c.bf16 %v502_v3, %v500_v2 }
 0x1db   :  { %297 = vmatmul.bf16.vlgmr.msra.gmra.mxu3 %v288_v4 }
 0x25e   :  { %v298_v7 = vpop.f32.mrf.mxu3 }
 0x25f   :  { %v303_v11 = vadd.f32 %v298_v7, %v171_v10  ;;  %v178_v10 = vadd.f32 %v636_v26, %v159_v9 }
 0x261   :  { %503 = vtanh.f32 %v303_v11 }
 0x266   :  { %v300_v13 = vpop.f32.mrf.mxu3 }
 0x267   :  { %v304_v14 = vadd.f32 %v300_v13, %v172_v12  ;;  %v504_v15 = vpop.eup %503 }
 0x269   :  { %505 = vtanh.f32 %v304_v14 }
 0x26f   :  { %v506_v16 = vpop.eup %505 }
 0x270   :  { %v307_v17 = vpack.c.bf16 %v506_v16, %v504_v15 }
 0x272   :  { %316 = vmatmul.bf16.vlgmr.msrb.gmra.mxu0 %v307_v17 }
 0x2ef   :  { %v317_v22 = vpop.f32.mrf.mxu0 }
 0x2f0   :  { %v322_v23 = vadd.f32 %v317_v22, %v173_v21 }
 0x2f2   :  { %507 = vtanh.f32 %v322_v23 }
 0x2f7   :  { %v319_v30 = vpop.f32.mrf.mxu0 }
 0x2f8   :  { %v508_v31 = vpop.eup %507  ;;  %v323_v32 = vadd.f32 %v319_v30, %v174_v29 }
 0x2f9   :  { %v386_v33 = vmul.f32 %v508_v31, %v677_v28 }
 0x2fa   :  { %509 = vtanh.f32 %v323_v32 }
 0x2fb   :  { %394 = vadd.xlane.f32.xlu1 %v386_v33 }
 0x300   :  { %v510_v34 = vpop.eup %509 }
 0x301   :  { %v387_v35 = vmul.f32 %v510_v34, %v677_v28  ;;  %v326_v36 = vpack.c.bf16 %v510_v34, %v508_v31  ;;  %v161_v31 = vmul.f32 %v630_v24, %v141_v62 }
 0x303   :  { %396 = vadd.xlane.f32.xlu2 %v387_v35  ;;  %335 = vmatmul.bf16.vlgmr.msrb.gmra.mxu1 %v326_v36  ;;  %v180_v32 = vadd.f32 %v636_v26, %v161_v31 }
 0x36e   :  { %v395_v42 = vpop.xlane.xlu1 %394 }
 0x36f   :  { %v414_v43 = vadd.f32 %v682_v40, %v395_v42 }
 0x371   :  { %v422_v44 = vmax.f32 %v414_v43, 0.0 }
 0x373   :  { %431 = vst.msk [vmem:[%s752_s7] sm:$0xff] %vm430_vm0, %v422_v44 }
 0x376   :  { %v397_v45 = vpop.xlane.xlu2 %396 }
 0x377   :  { %v415_v46 = vadd.f32 %v682_v40, %v397_v45 }
 0x379   :  { %v423_v47 = vmax.f32 %v415_v46, 0.0 }
 0x37b   :  { %432 = vst.msk [vmem:[%s752_s7 + $0x8] sm:$0xff] %vm430_vm0, %v423_v47 }
 0x380   :  { %v336_v50 = vpop.f32.mrf.mxu1 }
 0x381   :  { %v341_v51 = vadd.f32 %v336_v50, %v175_v49 }
 0x383   :  { %511 = vtanh.f32 %v341_v51 }
 0x388   :  { %v338_v54 = vpop.f32.mrf.mxu1 }
 0x389   :  { %v512_v55 = vpop.eup %511  ;;  %v342_v56 = vadd.f32 %v338_v54, %v176_v53 }
 0x38a   :  { %v388_v57 = vmul.f32 %v512_v55, %v677_v28 }
 0x38b   :  { %513 = vtanh.f32 %v342_v56 }
 0x38c   :  { %398 = vadd.xlane.f32.xlu0 %v388_v57 }
 0x391   :  { %v514_v58 = vpop.eup %513 }
 0x392   :  { %v389_v59 = vmul.f32 %v514_v58, %v677_v28  ;;  %v345_v60 = vpack.c.bf16 %v514_v58, %v512_v55 }
 0x394   :  { %400 = vadd.xlane.f32.xlu2 %v389_v59  ;;  %354 = vmatmul.bf16.vlgmr.msrb.gmra.mxu2 %v345_v60 }
 0x3ff   :  { %v399_v63 = vpop.xlane.xlu0 %398 }
 0x400   :  { %v416_v0 = vadd.f32 %v682_v40, %v399_v63 }
 0x402   :  { %v424_v1 = vmax.f32 %v416_v0, 0.0 }
 0x404   :  { %433 = vst.msk [vmem:[%s752_s7 + $0x10] sm:$0xff] %vm430_vm0, %v424_v1 }
 0x407   :  { %v401_v2 = vpop.xlane.xlu2 %400 }
 0x408   :  { %v417_v3 = vadd.f32 %v682_v40, %v401_v2 }
 0x40a   :  { %v425_v4 = vmax.f32 %v417_v3, 0.0 }
 0x40c   :  { %434 = vst.msk [vmem:[%s752_s7 + $0x18] sm:$0xff] %vm430_vm0, %v425_v4 }
 0x417   :  { %v355_v7 = vpop.f32.mrf.mxu2 }
 0x418   :  { %v360_v8 = vadd.f32 %v355_v7, %v177_v6 }
 0x41a   :  { %515 = vtanh.f32 %v360_v8 }
 0x41f   :  { %v357_v11 = vpop.f32.mrf.mxu2 }
 0x420   :  { %v516_v12 = vpop.eup %515  ;;  %v361_v13 = vadd.f32 %v357_v11, %v178_v10 }
 0x421   :  { %v390_v14 = vmul.f32 %v516_v12, %v677_v28 }
 0x422   :  { %517 = vtanh.f32 %v361_v13 }
 0x423   :  { %402 = vadd.xlane.f32.xlu1 %v390_v14 }
 0x428   :  { %v518_v15 = vpop.eup %517 }
 0x429   :  { %v391_v16 = vmul.f32 %v518_v15, %v677_v28  ;;  %v364_v17 = vpack.c.bf16 %v518_v15, %v516_v12 }
 0x42b   :  { %404 = vadd.xlane.f32.xlu2 %v391_v16  ;;  %373 = vmatmul.bf16.vlgmr.msrb.gmra.mxu3 %v364_v17 }
 0x496   :  { %v403_v18 = vpop.xlane.xlu1 %402 }
 0x497   :  { %v418_v19 = vadd.f32 %v682_v40, %v403_v18 }
 0x499   :  { %v426_v20 = vmax.f32 %v418_v19, 0.0 }
 0x49b   :  { %435 = vst.msk [vmem:[%s752_s7 + $0x20] sm:$0xff] %vm430_vm0, %v426_v20 }
 0x49e   :  { %v405_v21 = vpop.xlane.xlu2 %404 }
 0x49f   :  { %v419_v22 = vadd.f32 %v682_v40, %v405_v21 }
 0x4a1   :  { %v427_v23 = vmax.f32 %v419_v22, 0.0 }
 0x4a3   :  { %436 = vst.msk [vmem:[%s752_s7 + $0x28] sm:$0xff] %vm430_vm0, %v427_v23 }
 0x4ae   :  { %v374_v29 = vpop.f32.mrf.mxu3 }
 0x4af   :  { %v379_v30 = vadd.f32 %v374_v29, %v179_v27 }
 0x4b1   :  { %519 = vtanh.f32 %v379_v30 }
 0x4b6   :  { %v376_v33 = vpop.f32.mrf.mxu3 }
 0x4b7   :  { %v520_v34 = vpop.eup %519  ;;  %v380_v35 = vadd.f32 %v376_v33, %v180_v32 }
 0x4b8   :  { %v392_v36 = vmul.f32 %v520_v34, %v677_v28 }
 0x4b9   :  { %521 = vtanh.f32 %v380_v35 }
 0x4ba   :  { %406 = vadd.xlane.f32.xlu0 %v392_v36 }
 0x4bf   :  { %v522_v37 = vpop.eup %521 }
 0x4c0   :  { %v393_v38 = vmul.f32 %v522_v37, %v677_v28 }
 0x4c2   :  { %408 = vadd.xlane.f32.xlu1 %v393_v38 }
 0x52d   :  { %v407_v39 = vpop.xlane.xlu0 %406 }
 0x52e   :  { %v420_v41 = vadd.f32 %v682_v40, %v407_v39 }
 0x530   :  { %v428_v42 = vmax.f32 %v420_v41, 0.0 }
 0x532   :  { %437 = vst.msk [vmem:[%s752_s7 + $0x30] sm:$0xff] %vm430_vm0, %v428_v42 }
 0x535   :  { %v409_v24 = vpop.xlane.xlu1 %408 }
 0x536   :  { %v421_v26 = vadd.f32 %v682_v40, %v409_v24 }
 0x538   :  { %v429_v43 = vmax.f32 %v421_v26, 0.0 }
 0x53a   :  { %438 = vst.msk [vmem:[%s752_s7 + $0x38] sm:$0xff] %vm430_vm0, %v429_v43 }

</bundles_post_ra>
